<compile_context>
chip_gen: v6e
topology: v6e:2x2x1
jax: 0.10.0
libtpu: 0.0.40
codegen_flags: <defaults>
</compile_context>

<pallas_src>
import functools
import math

import jax
import jax.numpy as jnp
from jax.experimental import pallas as pl
from jax.experimental.pallas import tpu as pltpu


# ----------------------------------------------------------------------------
# Helpers
# ----------------------------------------------------------------------------

def _round_up(x, m):
    return ((x + m - 1) // m) * m


def _tiling(size, align, pref):
    """Round `size` up to a multiple of `align`; pick a tile <= `pref` (a
    multiple of `align`) that divides the padded size exactly."""
    p = _round_up(size, align)
    if p <= pref:
        return p, p
    for t in range(pref, align - 1, -align):
        if p % t == 0:
            return p, t
    return _round_up(p, pref), pref


# ----------------------------------------------------------------------------
# Pallas kernels
# ----------------------------------------------------------------------------

def _gemm_bn_kernel(*refs, relu, has_res):
    """M/N/K-tiled GEMM accumulating directly into the resident output block.

    Epilogue (last K step, f32): per-output-channel scale/bias (folded BN),
    optional residual add, optional ReLU.
    """
    if has_res:
        a_ref, b_ref, s_ref, t_ref, r_ref, o_ref = refs
    else:
        a_ref, b_ref, s_ref, t_ref, o_ref = refs

    k = pl.program_id(2)

    @pl.when(k == 0)
    def _():
        o_ref[...] = jnp.zeros_like(o_ref)

    o_ref[...] += jnp.dot(a_ref[...], b_ref[...],
                          preferred_element_type=jnp.float32)

    @pl.when(k == pl.num_programs(2) - 1)
    def _():
        y = o_ref[...] * s_ref[...] + t_ref[...]
        if has_res:
            y = y + r_ref[...]
        if relu:
            y = jnp.maximum(y, 0.0)
        o_ref[...] = y


def _maxpool_kernel(x_ref, o_ref):
    """Max-accumulate over the window-tap grid axis (innermost)."""
    t = pl.program_id(1)

    @pl.when(t == 0)
    def _():
        o_ref[...] = jnp.full_like(o_ref, -jnp.inf)

    o_ref[...] = jnp.maximum(o_ref[...], x_ref[0])


def _mean_reduce_kernel(x_ref, o_ref):
    # x: (N, S, C) -> mean over spatial axis (tiny tail tensor).
    o_ref[...] = jnp.mean(x_ref[...], axis=1)


# ----------------------------------------------------------------------------
# Pallas wrappers
# ----------------------------------------------------------------------------

def matmul_bn(a, b, scale, bias, residual=None, relu=False):
    """y = (a @ b) * scale[N] + bias[N] [+ residual] [ReLU].

    a: (M, K), b: (K, N). A/B are fed to the MXU in bf16; accumulation and the
    epilogue stay in f32 (v5e-safe). Tiles: tm<=256, tn<=256, tk<=512 — fits
    comfortably in v7x's 32 MiB scoped VMEM with double-buffering.
    """
    M, K = a.shape
    _, N = b.shape
    Mp, tm = _tiling(M, 16, 256)    # 16-aligned sublanes for bf16 packing
    Np, tn = _tiling(N, 128, 256)
    Kp, tk = _tiling(K, 128, 512)

    a_p = jnp.pad(a, ((0, Mp - M), (0, Kp - K))).astype(jnp.bfloat16)
    b_p = jnp.pad(b, ((0, Kp - K), (0, Np - N))).astype(jnp.bfloat16)
    s_p = jnp.pad(scale.astype(jnp.float32), (0, Np - N)).reshape(1, Np)
    t_p = jnp.pad(bias.astype(jnp.float32), (0, Np - N)).reshape(1, Np)

    inputs = [a_p, b_p, s_p, t_p]
    in_specs = [
        pl.BlockSpec((tm, tk), lambda i, j, k: (i, k)),
        pl.BlockSpec((tk, tn), lambda i, j, k: (k, j)),
        pl.BlockSpec((1, tn), lambda i, j, k: (0, j)),
        pl.BlockSpec((1, tn), lambda i, j, k: (0, j)),
    ]
    has_res = residual is not None
    if has_res:
        r_p = jnp.pad(residual.astype(jnp.float32),
                      ((0, Mp - M), (0, Np - N)))
        inputs.append(r_p)
        in_specs.append(pl.BlockSpec((tm, tn), lambda i, j, k: (i, j)))

    out = pl.pallas_call(
        functools.partial(_gemm_bn_kernel, relu=relu, has_res=has_res),
        out_shape=jax.ShapeDtypeStruct((Mp, Np), jnp.float32),
        grid_spec=pltpu.PrefetchScalarGridSpec(
            num_scalar_prefetch=0,
            grid=(Mp // tm, Np // tn, Kp // tk),   # K innermost (reduction)
            in_specs=in_specs,
            out_specs=pl.BlockSpec((tm, tn), lambda i, j, k: (i, j)),
        ),
        compiler_params=pltpu.CompilerParams(
            dimension_semantics=("parallel", "parallel", "arbitrary")),
    )(*inputs)
    return out[:M, :N]


def _window_slices(x, ksize, stride, pad, pad_value=0.0):
    """x: (N, D, H, W, C) -> list of kD*kH*kW shifted/strided views, each
    (N, Do, Ho, Wo, C), ordered (kd, kh, kw)-major."""
    kd, kh, kw = ksize
    sd, sh, sw = stride
    pd, ph, pw = pad
    N, D, H, W, C = x.shape
    xp = jnp.pad(x, ((0, 0), (pd, pd), (ph, ph), (pw, pw), (0, 0)),
                 constant_values=pad_value)
    Do = (D + 2 * pd - kd) // sd + 1
    Ho = (H + 2 * ph - kh) // sh + 1
    Wo = (W + 2 * pw - kw) // sw + 1
    slices = []
    for a in range(kd):
        for b in range(kh):
            for c in range(kw):
                slices.append(xp[:, a:a + (Do - 1) * sd + 1:sd,
                                    b:b + (Ho - 1) * sh + 1:sh,
                                    c:c + (Wo - 1) * sw + 1:sw, :])
    return slices, (Do, Ho, Wo)


def conv3d_bn(x, w, scale, bias, stride, pad, relu, residual=None):
    """x: (N,D,H,W,C) NDHWC; w: PyTorch layout (O, Cin, kd, kh, kw)."""
    O, Cin, kd, kh, kw = w.shape
    N = x.shape[0]
    slices, (Do, Ho, Wo) = _window_slices(x, (kd, kh, kw), stride, pad)
    M = N * Do * Ho * Wo
    # (N,Do,Ho,Wo,K3,C) -> (M, K3*Cin): natural tap-major / channel-minor
    # flattening, no relayout (transpose) of the big activation tensor.
    patches = jnp.stack(slices, axis=4).reshape(M, kd * kh * kw * Cin)
    # Match that layout by permuting the small weight instead: (kd,kh,kw,Cin,O).
    w2 = jnp.transpose(w, (2, 3, 4, 1, 0)).reshape(kd * kh * kw * Cin, O)
    r = None if residual is None else residual.reshape(M, O)
    out = matmul_bn(patches, w2, scale, bias, residual=r, relu=relu)
    return out.reshape(N, Do, Ho, Wo, O)


def maxpool3d(x, ksize=(3, 3, 3), stride=(2, 2, 2), pad=(1, 1, 1)):
    N, _, _, _, C = x.shape
    slices, (Do, Ho, Wo) = _window_slices(x, ksize, stride, pad,
                                          pad_value=-jnp.inf)
    M = N * Do * Ho * Wo
    K3 = len(slices)
    stacked = jnp.stack([s.reshape(M, C) for s in slices], axis=0)  # (K3,M,C)
    Mp, tm = _tiling(M, 8, 512)
    stacked = jnp.pad(stacked, ((0, 0), (0, Mp - M), (0, 0)))
    out = pl.pallas_call(
        _maxpool_kernel,
        out_shape=jax.ShapeDtypeStruct((Mp, C), jnp.float32),
        grid_spec=pltpu.PrefetchScalarGridSpec(
            num_scalar_prefetch=0,
            grid=(Mp // tm, K3),                    # taps innermost (reduction)
            in_specs=[pl.BlockSpec((1, tm, C), lambda m, t: (t, m, 0))],
            out_specs=pl.BlockSpec((tm, C), lambda m, t: (m, 0)),
        ),
        compiler_params=pltpu.CompilerParams(
            dimension_semantics=("parallel", "arbitrary")),
    )(stacked)
    return out[:M].reshape(N, Do, Ho, Wo, C)


def adaptive_avgpool_111(x):
    N, D, H, W, C = x.shape
    xr = x.reshape(N, D * H * W, C)
    # Tiny tail tensor (N x S x 512) -> whole-array block, lane-dense last dim.
    return pl.pallas_call(
        _mean_reduce_kernel,
        out_shape=jax.ShapeDtypeStruct((N, C), jnp.float32),
    )(xr)


# ----------------------------------------------------------------------------
# Parameter init (deterministic, mirrors the PyTorch __init__ shapes/inits)
# ----------------------------------------------------------------------------

BN_EPS = 1e-5


def bn_affine(c):
    # eval-mode BN with running_mean=0, running_var=1, gamma=1, beta=0
    scale = jnp.full((c,), 1.0 / math.sqrt(1.0 + BN_EPS), jnp.float32)
    bias = jnp.zeros((c,), jnp.float32)
    return scale, bias


def kaiming_conv(key, shape):
    # nn.init.kaiming_normal_(mode='fan_out', nonlinearity='relu')
    o, c, kd, kh, kw = shape
    fan_out = o * kd * kh * kw
    std = math.sqrt(2.0 / fan_out)
    return std * jax.random.normal(key, shape, jnp.float32)


def init_params(key, layers=(1, 1, 1, 1), num_classes=10):
    keys = iter(jax.random.split(key, 64))
    params = {"conv1": kaiming_conv(next(keys), (64, 2, 7, 7, 7))}
    inplanes = 64
    all_layers = []
    for planes, stride, n in zip((64, 128, 256, 512), (1, 2, 2, 2), layers):
        blocks = []
        for bi in range(n):
            s = stride if bi == 0 else 1
            blk = {
                "stride": s,
                "conv1": kaiming_conv(next(keys), (planes, inplanes, 3, 3, 3)),
                "conv2": kaiming_conv(next(keys), (planes, planes, 3, 3, 3)),
            }
            if s != 1 or inplanes != planes:  # BasicBlock.expansion == 1
                blk["down"] = kaiming_conv(next(keys), (planes, inplanes, 1, 1, 1))
            blocks.append(blk)
            inplanes = planes
        all_layers.append(blocks)
    params["layers"] = all_layers
    # nn.Linear(512, num_classes) default init
    fan_in = 512
    bound = 1.0 / math.sqrt(fan_in)
    params["fc_w"] = jax.random.uniform(next(keys), (num_classes, 512),
                                        jnp.float32, -bound, bound)
    params["fc_b"] = jax.random.uniform(next(keys), (num_classes,),
                                        jnp.float32, -bound, bound)
    return params


# ----------------------------------------------------------------------------
# Forward pass (ResNet3D with BasicBlock)
# ----------------------------------------------------------------------------

def resnet3d_forward(params, x_ncdhw):
    x = jnp.transpose(x_ncdhw, (0, 2, 3, 4, 1)).astype(jnp.float32)  # NDHWC

    # stem: conv1 (k7, stride [1,2,2], pad [3,1,1]) + bn1 + relu + maxpool
    s, b = bn_affine(64)
    x = conv3d_bn(x, params["conv1"], s, b, stride=(1, 2, 2), pad=(3, 1, 1),
                  relu=True)
    x = maxpool3d(x, ksize=(3, 3, 3), stride=(2, 2, 2), pad=(1, 1, 1))

    # residual layers (BasicBlock); residual add + ReLU fused into conv2's GEMM
    for layer in params["layers"]:
        for blk in layer:
            st = blk["stride"]
            planes = blk["conv1"].shape[0]
            s1, b1 = bn_affine(planes)
            out = conv3d_bn(x, blk["conv1"], s1, b1,
                            stride=(st, st, st), pad=(1, 1, 1), relu=True)
            if "down" in blk:
                sd_, bd_ = bn_affine(planes)
                identity = conv3d_bn(x, blk["down"], sd_, bd_,
                                     stride=(st, st, st), pad=(0, 0, 0),
                                     relu=False)
            else:
                identity = x
            s2, b2 = bn_affine(planes)
            x = conv3d_bn(out, blk["conv2"], s2, b2,
                          stride=(1, 1, 1), pad=(1, 1, 1), relu=True,
                          residual=identity)

    # head: adaptive avgpool (1,1,1) + flatten + fc
    x = adaptive_avgpool_111(x)  # (N, 512)
    num_classes = params["fc_w"].shape[0]
    logits = matmul_bn(x, params["fc_w"].T,
                       jnp.ones((num_classes,), jnp.float32),
                       params["fc_b"], relu=False)
    return logits


# ----------------------------------------------------------------------------
# Main
# ----------------------------------------------------------------------------

if __name__ == "__main__":
    key = jax.random.PRNGKey(0)
    pkey, xkey = jax.random.split(key)

    num_classes = 10
    params = init_params(pkey, layers=(1, 1, 1, 1), num_classes=num_classes)

    # input matches conv1's expected 2 channels: (batch, C=2, D=8, H=16, W=16)
    x = jax.random.normal(xkey, (2, 2, 8, 16, 16), jnp.float32)

    logits = resnet3d_forward(params, x)
    logits = jax.block_until_ready(logits)

    assert logits.shape == (2, num_classes), logits.shape
    assert jnp.all(jnp.isfinite(logits))
    print("KERNEL_OK")
</pallas_src>

<mosaic_0001>
module attributes {stable_mosaic.version = 11 : i64} {
  func.func @_gemm_bn_kernel(%arg0: i32, %arg1: i32, %arg2: i32, %arg3: memref<192x384xbf16, #tpu.memory_space<vmem>>, %arg4: memref<384x128xbf16, #tpu.memory_space<vmem>>, %arg5: memref<1x128xf32, #tpu.memory_space<vmem>>, %arg6: memref<1x128xf32, #tpu.memory_space<vmem>>, %arg7: memref<192x128xf32, #tpu.memory_space<vmem>>) attributes {dimension_semantics = [#tpu.dimension_semantics<parallel>, #tpu.dimension_semantics<parallel>, #tpu.dimension_semantics<arbitrary>], iteration_bounds = array<i64: 3, 1, 2>, scalar_prefetch = 0 : i64, scratch_operands = 0 : i64, tpu.core_type = #tpu.core_type<tc>, window_params = [{transform_indices = @transform_0, window_bounds = array<i64: 192, 384>}, {transform_indices = @transform_1, window_bounds = array<i64: 384, 128>}, {transform_indices = @transform_2, window_bounds = array<i64: 1, 128>}, {transform_indices = @transform_3, window_bounds = array<i64: 1, 128>}, {transform_indices = @transform_4, window_bounds = array<i64: 192, 128>}]} {
    %c0_i32 = arith.constant 0 : i32
    %0 = arith.cmpi eq, %arg2, %c0_i32 : i32
    %1 = arith.extui %0 : i1 to i32
    %c0_i32_0 = arith.constant 0 : i32
    %2 = arith.cmpi ne, %1, %c0_i32_0 : i32
    scf.if %2 {
      %cst_9 = arith.constant 0.000000e+00 : f32
      %12 = vector.broadcast %cst_9 : f32 to vector<192x128xf32>
      %c0_10 = arith.constant 0 : index
      %c0_11 = arith.constant 0 : index
      %13 = vector.load %arg7[%c0_10, %c0_11] : memref<192x128xf32, #tpu.memory_space<vmem>>, vector<192x128xf32>
      tpu.vector_store %arg7[%c0_10, %c0_11], %12 {strides = array<i32>} : memref<192x128xf32, #tpu.memory_space<vmem>>, vector<192x128xf32>,
    } else {
    }
    %c0 = arith.constant 0 : index
    %c0_1 = arith.constant 0 : index
    %3 = vector.load %arg7[%c0, %c0_1] : memref<192x128xf32, #tpu.memory_space<vmem>>, vector<192x128xf32>
    %c0_2 = arith.constant 0 : index
    %c0_3 = arith.constant 0 : index
    %4 = vector.load %arg3[%c0_2, %c0_3] : memref<192x384xbf16, #tpu.memory_space<vmem>>, vector<192x384xbf16>
    %c0_4 = arith.constant 0 : index
    %c0_5 = arith.constant 0 : index
    %5 = vector.load %arg4[%c0_4, %c0_5] : memref<384x128xbf16, #tpu.memory_space<vmem>>, vector<384x128xbf16>
    %cst = arith.constant dense<0.000000e+00> : vector<192x128xf32>
    %6 = tpu.matmul %4, %5, %cst {dimension_numbers = #tpu.dot_dimension_numbers<[1], [0], [0], [1], [0, 0, 1, 1], [], []>} : vector<192x384xbf16>, vector<384x128xbf16>, vector<192x128xf32> -> vector<192x128xf32>
    %7 = arith.addf %3, %6 : vector<192x128xf32>
    %c0_6 = arith.constant 0 : index
    %c0_7 = arith.constant 0 : index
    %8 = vector.load %arg7[%c0_6, %c0_7] : memref<192x128xf32, #tpu.memory_space<vmem>>, vector<192x128xf32>
    tpu.vector_store %arg7[%c0_6, %c0_7], %7 {strides = array<i32>} : memref<192x128xf32, #tpu.memory_space<vmem>>, vector<192x128xf32>,
    %c1_i32 = arith.constant 1 : i32
    %9 = arith.cmpi eq, %arg2, %c1_i32 : i32
    %10 = arith.extui %9 : i1 to i32
    %c0_i32_8 = arith.constant 0 : i32
    %11 = arith.cmpi ne, %10, %c0_i32_8 : i32
    scf.if %11 {
      %c0_9 = arith.constant 0 : index
      %c0_10 = arith.constant 0 : index
      %12 = vector.load %arg7[%c0_9, %c0_10] : memref<192x128xf32, #tpu.memory_space<vmem>>, vector<192x128xf32>
      %c0_11 = arith.constant 0 : index
      %c0_12 = arith.constant 0 : index
      %13 = vector.load %arg5[%c0_11, %c0_12] : memref<1x128xf32, #tpu.memory_space<vmem>>, vector<1x128xf32>
      %14 = vector.broadcast %13 : vector<1x128xf32> to vector<192x128xf32>
      %15 = arith.mulf %12, %14 : vector<192x128xf32>
      %c0_13 = arith.constant 0 : index
      %c0_14 = arith.constant 0 : index
      %16 = vector.load %arg6[%c0_13, %c0_14] : memref<1x128xf32, #tpu.memory_space<vmem>>, vector<1x128xf32>
      %17 = vector.broadcast %16 : vector<1x128xf32> to vector<192x128xf32>
      %18 = arith.addf %15, %17 : vector<192x128xf32>
      %cst_15 = arith.constant 0.000000e+00 : f32
      %19 = vector.broadcast %cst_15 : f32 to vector<192x128xf32>
      %20 = arith.maximumf %18, %19 : vector<192x128xf32>
      %c0_16 = arith.constant 0 : index
      %c0_17 = arith.constant 0 : index
      %21 = vector.load %arg7[%c0_16, %c0_17] : memref<192x128xf32, #tpu.memory_space<vmem>>, vector<192x128xf32>
      tpu.vector_store %arg7[%c0_16, %c0_17], %20 {strides = array<i32>} : memref<192x128xf32, #tpu.memory_space<vmem>>, vector<192x128xf32>,
    } else {
    }
    return
  }
  func.func @transform_0(%arg0: i32, %arg1: i32, %arg2: i32) -> (i32, i32) {
    %c0_i32 = arith.constant 0 : i32
    return %arg0, %arg2 : i32, i32
  }
  func.func @transform_1(%arg0: i32, %arg1: i32, %arg2: i32) -> (i32, i32) {
    %c0_i32 = arith.constant 0 : i32
    return %arg2, %arg1 : i32, i32
  }
  func.func @transform_2(%arg0: i32, %arg1: i32, %arg2: i32) -> (i32, i32) {
    %c0_i32 = arith.constant 0 : i32
    %c0_i32_0 = arith.constant 0 : i32
    return %c0_i32, %arg1 : i32, i32
  }
  func.func @transform_3(%arg0: i32, %arg1: i32, %arg2: i32) -> (i32, i32) {
    %c0_i32 = arith.constant 0 : i32
    %c0_i32_0 = arith.constant 0 : i32
    return %c0_i32, %arg1 : i32, i32
  }
  func.func @transform_4(%arg0: i32, %arg1: i32, %arg2: i32) -> (i32, i32) {
    %c0_i32 = arith.constant 0 : i32
    return %arg0, %arg1 : i32, i32
  }
}

</mosaic_0001>

<bundles_post_ra>
// kernel: tpu_custom_call.1
= control target key start
LH: loop header
LB: loop body
LE: loop exit
PB: predicated region body
PF: predicated region fallthrough
CT: control target
= control target key end

     0   :  { %s2620_s0 = inlined_call_operand.hbm [shape: bf16[576,768], index: 0, kind: input, shape index: {}]   ;;  %s2621_s1 = inlined_call_operand.hbm [shape: bf16[768,128], index: 1, kind: input, shape index: {}]   ;;  %s2622_s2 = inlined_call_operand.vmem [shape: f32[1,128], index: 2, kind: input, shape index: {}]   ;;  %s2623_s3 = inlined_call_operand.vmem [shape: f32[1,128], index: 3, kind: input, shape index: {}]   ;;  %s2624_s4 = inlined_call_operand.hbm [shape: f32[576,128], index: 4, kind: output, shape index: {}]  }
   0x1   :  { %2629 = sst [smem:[#allocation16_spill]] %s2620_s0 }
   0x2   :  { %2630 = sst [smem:[#allocation17_spill]] %s2622_s2 }
   0x3   :  { %2631 = sst [smem:[#allocation18_spill]] %s2623_s3 }
   0x4   :  { %2632 = sst [smem:[#allocation19_spill]] %s2624_s4 }
   0x5   :  { %9 = vsyncpa [#allocation3], 0 }
   0x6   :  { %11 = vsyncpa [#allocation3 + $0x1], 0 }
   0x7   :  { %12 = vsyncpa [#allocation6], 0 }
   0x8   :  { %14 = vsyncpa [#allocation6 + $0x1], 0 }
   0x9   :  { %15 = vsyncpa [#allocation4], 0 }
   0xa   :  { %17 = vsyncpa [#allocation4 + $0x1], 0  ;;  %s2088_s15 = smov 0   ;;  %s2090_s16 = smov 0  }
   0xb   :  { %s2092_s17 = smov 0   ;;  %s2094_s18 = smov 0  }
   0xc   :  { %s2096_s19 = smov 0   ;;  %s2098_s20 = smov 0  }
   0xd   :  { %s2100_s21 = smov 0   ;;  %s2102_s22 = smov 0  }
   0xe   :  { %s2104_s23 = smov 0   ;;  %s2106_s24 = smov 0  }
   0xf   :  { %s2108_s25 = smov 0   ;;  %s2110_s26 = smov 0  }
  0x10   :  { %s2112_s27 = smov 0   ;;  %s2114_s28 = smov 0  }
  0x11 LB: > { %2633 = sst [smem:[#allocation11_spill]] %s2034_s24  ;;  %s35_s29 = sadd.s32 1, %s2042_s26  ;;  %s2050_s28 = sphi %s2114_s28, %s23_s28   ;;  %s2046_s27 = sphi %s2112_s27, %s2657_s27   ;;  %s2042_s26 = sphi %s2110_s26, %s2669_s26   ;;  %s2038_s25 = sphi %s2108_s25, %s2655_s25   ;;  %s2034_s24 = sphi %s2106_s24, %s2668_s24   ;;  %s2030_s23 = sphi %s2104_s23, %s2667_s23   ;;  %s2026_s22 = sphi %s2102_s22, %s2666_s22   ;;  %s2022_s21 = sphi %s2100_s21, %s2665_s21   ;;  %s2018_s20 = sphi %s2098_s20, %s2664_s20   ;;  %s2014_s19 = sphi %s2096_s19, %s2663_s19   ;;  %s2010_s18 = sphi %s2094_s18, %s2662_s18   ;;  %s2006_s17 = sphi %s2092_s17, %s2661_s17   ;;  %s2002_s16 = sphi %s2090_s16, %s2660_s16   ;;  %s1998_s15 = sphi %s2088_s15, %s2659_s15  }
  0x12   : > { %2634 = sst [smem:[#allocation12_spill]] %s2038_s25  ;;  %s42_s30 = sadd.s32 1, %s2046_s27 }
  0x13   : > { %2635 = sst [smem:[#allocation13_spill]] %s2046_s27  ;;  %p36_p0 = scmp.ge.s32.totalorder %s35_s29, 2 }
  0x14   : > { %s51_s5 = sadd.s32 1, %s2030_s23  ;;  %p58_p1 = scmp.ne.s32.totalorder %s2030_s23, %s2026_s22 }
  0x15   : > { %p59_p2 = scmp.eq.s32.totalorder %s2050_s28, 0  ;;  %s2671_s29 = smov (%p36_p0, %s35_s29), 0 }
  0x16   : > { %2636 = sst [smem:[#allocation14_spill]] %s2671_s29  ;;  %s2673_s30 = smov (!%p36_p0, %s42_s30), %s2046_s27 }
  0x17   : > { %s2169_s6 = ssub.s32 %s2042_s26, %s2671_s29  ;;  %p2173_p3 = por %p59_p2, %p58_p1 }
  0x18   : > { %p44_p4 = scmp.ge.s32.totalorder %s2673_s30, 3  ;;  %p64_p5 = scmp.ne.s32.totalorder %s2026_s22, %s2022_s21 }
  0x19   : > { %s159_s8 = sadd.s32 1, %s2006_s17  ;;  %p1651_p6 = scmp.lt.s32.totalorder %s2050_s28, 6 }
  0x1a   : > { %s2675_s30 = smov (%p44_p4, %s2673_s30), 0  ;;  %s208_s9 = sand.u32 1, %s2030_s23  }
  0x1b   : > { %2638 = sst [smem:[#allocation15_spill]] %s2675_s30  ;;  %s46_s10 = ssub.s32 %s2046_s27, %s2675_s30 }
  0x1c   : > { %s48_s11 = sor.u32 %s2169_s6, %s46_s10  ;;  %p157_p7 = scmp.eq.s32.totalorder %s46_s10, 0 }
  0x1d   : > { %p49_p8 = scmp.eq.s32.totalorder %s48_s11, 0  ;;  %s1628_s12 = smul.u32 288, %s208_s9 }
  0x1e   : > { %s2188_s13 = scalar_select %p157_p7, %s2006_s17, %s159_s8  }
  0x1f   : > { %s2191_s14 = scalar_select %p49_p8, %s2030_s23, %s51_s5  }
  0x20   : > { %s214_s29 = smul.u32 3, %s2042_s26  ;;  %s212_s4 = scalar_lea.vmem [#allocation2], %s1628_s12 }
  0x21   : > { %s222_s25 = sshll.u32 %s212_s4, 4  ;;  %s1652_s3 = smul.u32 144, %s2046_s27  ;;  %s223_s25 = int_to_ptr.vmem [resolvable:$true] %s222_s25 }
  0x22   : > { %p2199_p9 = pnand %p1651_p6, %p2173_p3  ;;  %s2640_s0 = sld [smem:[#allocation16_spill]] }
  0x23   : > { %s219_s30 = sadd.s32 %s1652_s3, %s214_s29  ;;  %s209_s5 = scalar_lea.sflag [#allocation3], %s208_s9 }
  0x24   : > { %s1408_s10 = sshll.u32 %s219_s30, 6  ;;  %p1848_p10 = pneg %p2199_p9 }
  0x25   : > { %s1859_s12 = scalar_lea.vmem %s223_s25, 4608  ;;  %s2052_s4 = smov [#allocation2]  }
  0x26   : > { %p1860_p11 = scmp.ne.s32.totalorder %s223_s25, %s1859_s12  ;;  %s1864_s7 = sshll.u32 %s2052_s4, 4  ;;  %s1865_s7 = int_to_ptr.vmem [resolvable:$false] %s1864_s7 }
  0x27   : > { %s1866_s27 = scalar_lea.vmem %s1865_s7, 9216  ;;  %p1867_p0 = scmp.lt.s32.totalorder %s223_s25, %s1865_s7 }
  0x28   : > { %s221_s8 = scalar_lea.hbm %s2640_s0, %s1408_s10  ;;  %p1862_p12 = pnand %p1860_p11, %p1848_p10 }
  0x29   : > { %p1868_p1 = scmp.lt.s32.totalorder %s1866_s27, %s1859_s12 }
  0x2a   : > { %p1863_p13 = pneg %p1862_p12 }
  0x2b   : > { %p1869_p3 = por %p1868_p1, %p1867_p0 }
  0x2d   : > { %p1870_p4 = pnand %p1869_p3, %p1863_p13 }
  0x2f   : > { %1873 = shalt.err (!%p1870_p4)
}
  0x30   : > { %s2053_s3 = smov 384   ;;  %s2054_s24 = smov 192  }
  0x31   : > { %s2055_s27 = smov 12   ;;  %p1410_p7 = scmp.ge.s32.totalorder %s2050_s28, 1 }
  0x32   : > { %1643 = dma.hbm_to_vmem [thread:$0]  (!%p2199_p9), %s221_s8, 4608, %s223_s25, %s209_s5, %s2053_s3, %s2054_s24, %s2055_s27  }
  0x33   : > { %p252_p8 = scmp.lt.s32.totalorder %s2050_s28, 7  ;;  %s1402_s30 = sadd.s32 4294967295, %s2050_s28  }
  0x34   : > { %s1403_s9 = sadd.s32 4294967294, %s2050_s28   ;;  %p65_p11 = scmp.eq.s32.totalorder %s1402_s30, 0 }
  0x35   : > { %p2212_p10 = pnand %p1410_p7, %p252_p8  ;;  %p77_p12 = scmp.eq.s32.totalorder %s2169_s6, 0 }
  0x36   : > { %s79_s10 = sadd.s32 1, %s2018_s20  ;;  %p2223_p13 = por %p65_p11, %p64_p5 }
  0x37   : > { %p86_p9 = scmp.ne.s32.totalorder %s2018_s20, %s2014_s19  ;;  %p92_p1 = scmp.ne.s32.totalorder %s2014_s19, %s2010_s18 }
  0x38   : > { %s2230_s2 = scalar_select %p77_p12, %s2018_s20, %s79_s10  }
  0x39   : > { %p2234_p0 = por %p86_p9, %p59_p2  ;;  %p169_p3 = scmp.ne.s32.totalorder %s2006_s17, %s2002_s16 }
  0x3a   : > { %p170_p4 = scmp.eq.s32.totalorder %s1402_s30, 5  ;;  %p2242_p7 = por %p92_p1, %p65_p11 }
  0x3b   : > { %p175_p5 = scmp.ne.s32.totalorder %s2002_s16, %s1998_s15  ;;  %p176_p12 = scmp.eq.s32.totalorder %s1403_s9, 5 }
  0x3c   : > { %p2248_p8 = por %p170_p4, %p169_p3  ;;  %s232_s8 = sand.u32 1, %s2018_s20  }
  0x3d   : > { %s1478_s5 = smul.u32 3072, %s2042_s26  ;;  %p2254_p2 = por %p176_p12, %p175_p5 }
  0x3e   : > { %s1630_s4 = smul.u32 192, %s232_s8  ;;  %p2265_p11 = pnand %p1651_p6, %p2234_p0 }
  0x3f   : > { %s243_s3 = scalar_lea.hbm %s2621_s1, %s1478_s5  ;;  %s233_s9 = scalar_lea.sflag [#allocation6], %s232_s8 }
  0x40   : > { %s236_s27 = scalar_lea.vmem [#allocation5], %s1630_s4  ;;  %p1876_p9 = pneg %p2265_p11 }
  0x41   : > { %s244_s30 = sshll.u32 %s236_s27, 4  ;;  %s2056_s0 = smov [#allocation5]   ;;  %s245_s30 = int_to_ptr.vmem [resolvable:$true] %s244_s30 }
  0x42   : > { %s1887_s10 = scalar_lea.vmem %s245_s30, 3072  ;;  %s1892_s18 = sshll.u32 %s2056_s0, 4  ;;  %s1893_s18 = int_to_ptr.vmem [resolvable:$false] %s1892_s18 }
  0x43   : > { %p1888_p1 = scmp.ne.s32.totalorder %s245_s30, %s1887_s10  ;;  %s1894_s25 = scalar_lea.vmem %s1893_s18, 6144 }
  0x44   : > { %p1895_p5 = scmp.lt.s32.totalorder %s245_s30, %s1893_s18  ;;  %p1896_p6 = scmp.lt.s32.totalorder %s1894_s25, %s1887_s10 }
  0x45   : > { %p1890_p3 = pnand %p1888_p1, %p1876_p9 }
  0x46   : > { %p1897_p0 = por %p1896_p6, %p1895_p5 }
  0x47   : > { %p1891_p4 = pneg %p1890_p3 }
  0x49   : > { %p1898_p12 = pnand %p1897_p0, %p1891_p4 }
  0x4b   : > { %1901 = shalt.err (!%p1898_p12)
}
  0x4c   : > { %s2057_s5 = smov 64   ;;  %s2058_s4 = smov 4  }
  0x4d   : > { %1646 = dma.hbm_to_vmem [thread:$0]  (!%p2265_p11), %s243_s3, 3072, %s245_s30, %s233_s9, %s2057_s5, %s2057_s5, %s2058_s4  }
  0x4e   : > { %256 = sbr.rel (%p2212_p10) target bundleno = 491 (0x1eb), region = 36  ;;  %s258_s8 = sand.u32 (!%p2212_p10), 1, %s2026_s22  }
  0x4f   : > { %s1631_s7 = smul.u32 (!%p2212_p10), 288, %s258_s8  ;;  %s259_s0 = scalar_lea.sflag (!%p2212_p10), [#allocation3], %s258_s8 }
  0x51   : > { %s2276_s27 = scalar_lea.vmem (!%p2212_p10), [#allocation2], %s1631_s7 }
  0x53   : > { %1985 = dma.done.wait (%p2223_p13), %s259_s0, 4608  }
  0x54   : > { %1987 = vsyncadd (%p2223_p13), %s259_s0, 4294962688  ;;  %s267_s10 = sand.u32 1, %s2014_s19  }
  0x55   : > { %s1632_s24 = smul.u32 192, %s267_s10  ;;  %s268_s3 = scalar_lea.sflag [#allocation6], %s267_s10 }
  0x57   : > { %s2283_s30 = scalar_lea.vmem [#allocation5], %s1632_s24 }
  0x58   : > { %1989 = dma.done.wait (%p2242_p7), %s268_s3, 3072  }
  0x59   : > { %1991 = vsyncadd (%p2242_p7), %s268_s3, 4294964224  ;;  %s304_s29 = sand.u32 1, %s2002_s16   ;;  %s2648_s11 = sld [smem:[#allocation11_spill]] }
  0x5a   : > { %s1633_s9 = smul.u32 192, %s304_s29 }
  0x5c   : > { %s2292_s18 = scalar_lea.vmem [#allocation7], %s1633_s9 }
  0x5f   : > { %p1411_p10 = scmp.ne.s32.totalorder %s2648_s11, 0 }
  0x61   : > { %321 = sbr.rel (%p1411_p10) target bundleno = 115 (0x73), region = 48 }
  0x66   : > { %v2059_v0 = vmov 0.0  }
  0x67   : > { %322 = vst [vmem:[%s2292_s18] sm:$0xff] %v2059_v0  ;;  %323 = vst [vmem:[%s2292_s18 + $0x8] sm:$0xff] %v2059_v0 }
  0x68   : > { %324 = vst [vmem:[%s2292_s18 + $0x10] sm:$0xff] %v2059_v0  ;;  %325 = vst [vmem:[%s2292_s18 + $0x18] sm:$0xff] %v2059_v0 }
  0x69   : > { %326 = vst [vmem:[%s2292_s18 + $0x20] sm:$0xff] %v2059_v0  ;;  %327 = vst [vmem:[%s2292_s18 + $0x28] sm:$0xff] %v2059_v0 }
  0x6a   : > { %328 = vst [vmem:[%s2292_s18 + $0x30] sm:$0xff] %v2059_v0  ;;  %329 = vst [vmem:[%s2292_s18 + $0x38] sm:$0xff] %v2059_v0 }
  0x6b   : > { %330 = vst [vmem:[%s2292_s18 + $0x40] sm:$0xff] %v2059_v0  ;;  %331 = vst [vmem:[%s2292_s18 + $0x48] sm:$0xff] %v2059_v0 }
  0x6c   : > { %332 = vst [vmem:[%s2292_s18 + $0x50] sm:$0xff] %v2059_v0  ;;  %333 = vst [vmem:[%s2292_s18 + $0x58] sm:$0xff] %v2059_v0 }
  0x6d   : > { %334 = vst [vmem:[%s2292_s18 + $0x60] sm:$0xff] %v2059_v0  ;;  %335 = vst [vmem:[%s2292_s18 + $0x68] sm:$0xff] %v2059_v0 }
  0x6e   : > { %336 = vst [vmem:[%s2292_s18 + $0x70] sm:$0xff] %v2059_v0  ;;  %337 = vst [vmem:[%s2292_s18 + $0x78] sm:$0xff] %v2059_v0 }
  0x6f   : > { %338 = vst [vmem:[%s2292_s18 + $0x80] sm:$0xff] %v2059_v0  ;;  %339 = vst [vmem:[%s2292_s18 + $0x88] sm:$0xff] %v2059_v0 }
  0x70   : > { %340 = vst [vmem:[%s2292_s18 + $0x90] sm:$0xff] %v2059_v0  ;;  %341 = vst [vmem:[%s2292_s18 + $0x98] sm:$0xff] %v2059_v0 }
  0x71   : > { %342 = vst [vmem:[%s2292_s18 + $0xa0] sm:$0xff] %v2059_v0  ;;  %343 = vst [vmem:[%s2292_s18 + $0xa8] sm:$0xff] %v2059_v0 }
  0x72   : > { %344 = vst [vmem:[%s2292_s18 + $0xb0] sm:$0xff] %v2059_v0  ;;  %345 = vst [vmem:[%s2292_s18 + $0xb8] sm:$0xff] %v2059_v0 }
  0x73 PF: > { %v1774_v1 = vld [vmem:[%s2283_s30 + $0x78] sm:$0xff]   ;;  %v1777_v4 = vld [vmem:[%s2283_s30 + $0x70] sm:$0xff]   ;;  %v1780_v7 = vld [vmem:[%s2283_s30 + $0x68] sm:$0xff]   ;;  %s2649_s6 = sld [smem:[#allocation11_spill]] }
  0x74   : > { %v1775_v2 = vld [vmem:[%s2283_s30 + $0x38] sm:$0xff]   ;;  %1480 = vmatprep.subr.bf16.mxu0 %v1774_v1  ;;  %v1778_v5 = vld [vmem:[%s2283_s30 + $0x30] sm:$0xff]   ;;  %v1781_v8 = vld [vmem:[%s2283_s30 + $0x28] sm:$0xff]  }
  0x75   : > { %v1776_v3 = vld [vmem:[%s2283_s30 + $0xb8] sm:$0xff]   ;;  %1481 = vmatpush3.bf16.msra.mxu0 %v1775_v2  ;;  %v1779_v6 = vld [vmem:[%s2283_s30 + $0xb0] sm:$0xff]   ;;  %v1782_v9 = vld [vmem:[%s2283_s30 + $0xa8] sm:$0xff]  }
  0x76   : > { %1588 = vmatprep.subr.bf16.mxu1 %v1776_v3  ;;  %1482 = vmatprep.subr.bf16.mxu0 %v1777_v4  ;;  %v1783_v10 = vld [vmem:[%s2283_s30 + $0x60] sm:$0xff]   ;;  %v1786_v13 = vld [vmem:[%s2283_s30 + $0x58] sm:$0xff]   ;;  %v1789_v16 = vld [vmem:[%s2283_s30 + $0x50] sm:$0xff]  }
  0x77   : > { %1589 = vmatpush3.bf16.msra.mxu1 %v1776_v3  ;;  %v1784_v11 = vld [vmem:[%s2283_s30 + $0x20] sm:$0xff]   ;;  %v1788_v14 = vld [vmem:[%s2283_s30 + $0x98] sm:$0xff]   ;;  %v1791_v17 = vld [vmem:[%s2283_s30 + $0x90] sm:$0xff]  }
  0x78   : > { %1590 = vmatprep.subr.bf16.mxu1 %v1779_v6  ;;  %v1785_v12 = vld [vmem:[%s2283_s30 + $0xa0] sm:$0xff]   ;;  %v1787_v15 = vld [vmem:[%s2283_s30 + $0x18] sm:$0xff]   ;;  %v1790_v18 = vld [vmem:[%s2283_s30 + $0x10] sm:$0xff]  }
  0x79   : > { %1483 = vmatpush3.bf16.msra.mxu0 %v1778_v5  ;;  %v1792_v19 = vld [vmem:[%s2283_s30 + $0x48] sm:$0xff]   ;;  %v1795_v22 = vld [vmem:[%s2283_s30 + $0x40] sm:$0xff]   ;;  %v1810_v33 = vld [vmem:[%s2276_s27 + $0x50] ss:$12 sps:$4 sm:$0xff]   ;;  %p1472_p13 = scmp.ne.s32.totalorder %s2649_s6, 1 }
  0x7a   : > { %1484 = vmatprep.subr.bf16.mxu0 %v1780_v7  ;;  %v1793_v20 = vld [vmem:[%s2283_s30 + $0x8] sm:$0xff]   ;;  %v1797_v23 = vld [vmem:[%s2283_s30 + $0x80] sm:$0xff]   ;;  %v1808_v35 = vld [vmem:[%s2276_s27 + $0x30] ss:$12 sps:$4 sm:$0xff]   ;;  %s2650_s4 = sld [smem:[#allocation17_spill]] (!%p1472_p13) }
  0x7b   : > { %1591 = vmatpush3.bf16.msra.mxu1 %v1779_v6  ;;  %v1794_v21 = vld [vmem:[%s2283_s30 + $0x88] sm:$0xff]   ;;  %v1800_v24 = vld [vmem:[%s2276_s27 + $0x4] ss:$12 sps:$4 sm:$0xff]   ;;  %v1806_v32 = vld [vmem:[%s2276_s27 + $0x34] ss:$12 sps:$4 sm:$0xff]   ;;  %s2651_s0 = sld [smem:[#allocation18_spill]] (!%p1472_p13) }
  0x7c   : > { %1592 = vmatprep.subr.bf16.mxu1 %v1782_v9  ;;  %v1801_v25 = vld [vmem:[%s2276_s27 + $0x8] ss:$12 sps:$4 sm:$0xff]   ;;  %v1796_v26 = vld [vmem:[%s2283_s30] sm:$0xff]   ;;  %834 = vmatprep.mubr.bf16.mxu0 %v1800_v24  ;;  %v1811_v36 = vld [vmem:[%s2276_s27 + $0x4c] ss:$12 sps:$4 sm:$0xff]  }
  0x7d   : > { %1485 = vmatpush3.bf16.msra.mxu0 %v1781_v8  ;;  %1604 = vmatprep.mubr.bf16.mxu1 %v1801_v25  ;;  %v1798_v27 = vld [vmem:[%s2276_s27] ss:$12 sps:$4 sm:$0xff]   ;;  %v1803_v28 = vld [vmem:[%s2276_s27 + $0x1c] ss:$12 sps:$4 sm:$0xff]   ;;  %v1809_v30 = vld [vmem:[%s2276_s27 + $0x38] ss:$12 sps:$4 sm:$0xff]  }
  0x7e   : > { %1486 = vmatprep.subr.bf16.mxu0 %v1783_v10  ;;  %v1802_v29 = vld [vmem:[%s2276_s27 + $0x20] ss:$12 sps:$4 sm:$0xff]   ;;  %v1805_v31 = vld [vmem:[%s2276_s27 + $0x18] ss:$12 sps:$4 sm:$0xff]   ;;  %v1817_v34 = vld [vmem:[%s2276_s27 + $0x68] ss:$12 sps:$4 sm:$0xff]  }
  0x7f   : > { %1593 = vmatpush3.bf16.msra.mxu1 %v1782_v9  ;;  %v1818_v37 = vld [vmem:[%s2276_s27 + $0x80] ss:$12 sps:$4 sm:$0xff]   ;;  %v1825_v38 = vld [vmem:[%s2276_s27 + $0x98] ss:$12 sps:$4 sm:$0xff]   ;;  %v1813_v39 = vld [vmem:[%s2276_s27 + $0x48] ss:$12 sps:$4 sm:$0xff]  }
  0x80   : > { %1594 = vmatprep.subr.bf16.mxu1 %v1785_v12  ;;  %v1814_v40 = vld [vmem:[%s2276_s27 + $0x64] ss:$12 sps:$4 sm:$0xff]   ;;  %v1833_v42 = vld [vmem:[%s2276_s27 + $0xc8] ss:$12 sps:$4 sm:$0xff]   ;;  %v1816_v43 = vld [vmem:[%s2276_s27 + $0x60] ss:$12 sps:$4 sm:$0xff]  }
  0x81   : > { %1487 = vmatpush3.bf16.msra.mxu0 %v1784_v11  ;;  %v1826_v41 = vld [vmem:[%s2276_s27 + $0xb0] ss:$12 sps:$4 sm:$0xff]   ;;  %v1834_v45 = vld [vmem:[%s2276_s27 + $0xe0] ss:$12 sps:$4 sm:$0xff]   ;;  %v1841_v46 = vld [vmem:[%s2276_s27 + $0xf8] ss:$12 sps:$4 sm:$0xff]  }
  0x82   : > { %1488 = vmatprep.subr.bf16.mxu0 %v1786_v13  ;;  %v1819_v44 = vld [vmem:[%s2276_s27 + $0x7c] ss:$12 sps:$4 sm:$0xff]   ;;  %v1821_v47 = vld [vmem:[%s2276_s27 + $0x78] ss:$12 sps:$4 sm:$0xff]   ;;  %v1822_v48 = vld [vmem:[%s2276_s27 + $0x94] ss:$12 sps:$4 sm:$0xff]  }
  0x83   : > { %1595 = vmatpush3.bf16.msra.mxu1 %v1785_v12  ;;  %v1842_v49 = vld [vmem:[%s2276_s27 + $0x110] ss:$12 sps:$4 sm:$0xff]   ;;  %v1827_v51 = vld [vmem:[%s2276_s27 + $0xac] ss:$12 sps:$4 sm:$0xff]   ;;  %v1829_v52 = vld [vmem:[%s2276_s27 + $0xa8] ss:$12 sps:$4 sm:$0xff]  }
  0x84   : > { %1596 = vmatprep.subr.bf16.mxu1 %v1788_v14  ;;  %v1824_v50 = vld [vmem:[%s2276_s27 + $0x90] ss:$12 sps:$4 sm:$0xff]   ;;  %v1832_v54 = vld [vmem:[%s2276_s27 + $0xc0] ss:$12 sps:$4 sm:$0xff]   ;;  %v1837_v56 = vld [vmem:[%s2276_s27 + $0xd8] ss:$12 sps:$4 sm:$0xff]  }
  0x85   : > { %1489 = vmatpush3.bf16.msra.mxu0 %v1787_v15  ;;  %v1830_v53 = vld [vmem:[%s2276_s27 + $0xc4] ss:$12 sps:$4 sm:$0xff]   ;;  %v1835_v55 = vld [vmem:[%s2276_s27 + $0xdc] ss:$12 sps:$4 sm:$0xff]   ;;  %v1838_v57 = vld [vmem:[%s2276_s27 + $0xf4] ss:$12 sps:$4 sm:$0xff]  }
  0x86   : > { %1490 = vmatprep.subr.bf16.mxu0 %v1789_v16  ;;  %v1840_v58 = vld [vmem:[%s2276_s27 + $0xf0] ss:$12 sps:$4 sm:$0xff]   ;;  %v1843_v59 = vld [vmem:[%s2276_s27 + $0x10c] ss:$12 sps:$4 sm:$0xff]   ;;  %v1845_v60 = vld [vmem:[%s2276_s27 + $0x108] ss:$12 sps:$4 sm:$0xff]  }
  0x87   : > { %1597 = vmatpush3.bf16.msra.mxu1 %v1788_v14  ;;  %v346_v2 = vld [vmem:[%s2292_s18] sm:$0xff]  ;;  %v347_v10 = vld [vmem:[%s2292_s18 + $0x8] sm:$0xff]  ;;  %v349_v24 = vld [vmem:[%s2292_s18 + $0x18] sm:$0xff] }
  0x88   : > { %1598 = vmatprep.subr.bf16.mxu1 %v1791_v17 }
  0x89   : > { %1491 = vmatpush3.bf16.msra.mxu0 %v1790_v18 }
  0x8a   : > { %1492 = vmatprep.subr.bf16.mxu0 %v1792_v19 }
  0x8b   : > { %1599 = vmatpush3.bf16.msra.mxu1 %v1791_v17  ;;  %v348_v17 = vld [vmem:[%s2292_s18 + $0x10] sm:$0xff] }
  0x8c   : > { %1600 = vmatprep.subr.bf16.mxu1 %v1794_v21 }
  0x8d   : > { %1493 = vmatpush3.bf16.msra.mxu0 %v1793_v20 }
  0x8e   : > { %1494 = vmatprep.subr.bf16.mxu0 %v1795_v22 }
  0x8f   : > { %1601 = vmatpush3.bf16.msra.mxu1 %v1794_v21 }
  0x90   : > { %1602 = vmatprep.subr.bf16.mxu1 %v1797_v23 }
  0x91   : > { %1495 = vmatpush3.bf16.msra.mxu0 %v1796_v26 }
  0x93   : > { %1603 = vmatpush3.bf16.msra.mxu1 %v1797_v23 }
  0x94   : > { %835 = vmatmul.mubr.bf16.vlgmr.msra.gmra.mxu0 %v1798_v27 }
  0x95   : > { %842 = vmatprep.mubr.bf16.mxu0 %v1803_v28 }
  0x96   : > { %1605 = vmatmul.mubr.bf16.vlgmr.msra.gmra.mxu1 %v1802_v29 }
  0x97   : > { %1608 = vmatprep.mubr.bf16.mxu1 %v1809_v30 }
  0x9c   : > { %843 = vmatmul.mubr.bf16.gmra.mxu0 %v1805_v31 }
  0x9d   : > { %850 = vmatprep.mubr.bf16.mxu0 %v1806_v32  ;;  %v350_v32 = vld [vmem:[%s2292_s18 + $0x20] sm:$0xff] }
  0x9e   : > { %1609 = vmatmul.mubr.bf16.gmra.mxu1 %v1810_v33 }
  0x9f   : > { %1612 = vmatprep.mubr.bf16.mxu1 %v1817_v34 }
  0xa4   : > { %851 = vmatmul.mubr.bf16.gmra.mxu0 %v1808_v35 }
  0xa5   : > { %858 = vmatprep.mubr.bf16.mxu0 %v1811_v36 }
  0xa6   : > { %1613 = vmatmul.mubr.bf16.gmra.mxu1 %v1818_v37 }
  0xa7   : > { %1616 = vmatprep.mubr.bf16.mxu1 %v1825_v38 }
  0xac   : > { %859 = vmatmul.mubr.bf16.gmra.mxu0 %v1813_v39  ;;  %v351_v39 = vld [vmem:[%s2292_s18 + $0x28] sm:$0xff] }
  0xad   : > { %866 = vmatprep.mubr.bf16.mxu0 %v1814_v40 }
  0xae   : > { %1617 = vmatmul.mubr.bf16.gmra.mxu1 %v1826_v41 }
  0xaf   : > { %1620 = vmatprep.mubr.bf16.mxu1 %v1833_v42 }
  0xb4   : > { %867 = vmatmul.mubr.bf16.gmra.mxu0 %v1816_v43 }
  0xb5   : > { %874 = vmatprep.mubr.bf16.mxu0 %v1819_v44 }
  0xb6   : > { %1621 = vmatmul.mubr.bf16.gmra.mxu1 %v1834_v45  ;;  %v352_v45 = vld [vmem:[%s2292_s18 + $0x30] sm:$0xff] }
  0xb7   : > { %1624 = vmatprep.mubr.bf16.mxu1 %v1841_v46 }
  0xbc   : > { %875 = vmatmul.mubr.bf16.gmra.mxu0 %v1821_v47 }
  0xbd   : > { %882 = vmatprep.mubr.bf16.mxu0 %v1822_v48 }
  0xbe   : > { %1625 = vmatmul.mubr.bf16.gmra.mxu1 %v1842_v49 }
  0xc4   : > { %883 = vmatmul.mubr.bf16.gmra.mxu0 %v1824_v50 }
  0xc5   : > { %890 = vmatprep.mubr.bf16.mxu0 %v1827_v51 }
  0xcc   : > { %891 = vmatmul.mubr.bf16.gmra.mxu0 %v1829_v52  ;;  %v353_v52 = vld [vmem:[%s2292_s18 + $0x38] sm:$0xff] }
  0xcd   : > { %898 = vmatprep.mubr.bf16.mxu0 %v1830_v53 }
  0xd4   : > { %899 = vmatmul.mubr.bf16.gmra.mxu0 %v1832_v54 }
  0xd5   : > { %906 = vmatprep.mubr.bf16.mxu0 %v1835_v55 }
  0xdc   : > { %907 = vmatmul.mubr.bf16.gmra.mxu0 %v1837_v56 }
  0xdd   : > { %914 = vmatprep.mubr.bf16.mxu0 %v1838_v57 }
  0xe4   : > { %915 = vmatmul.mubr.bf16.gmra.mxu0 %v1840_v58 }
  0xe5   : > { %922 = vmatprep.mubr.bf16.mxu0 %v1843_v59 }
  0xec   : > { %923 = vmatmul.mubr.bf16.gmra.mxu0 %v1845_v60  ;;  %v354_v60 = vld [vmem:[%s2292_s18 + $0x40] sm:$0xff] }
 0x154   : > { %v1496_v61 = vpop.f32.mrf.mxu0 }
 0x156   : > { %v1497_v62 = vpop.f32.mrf.mxu0  ;;  %v1606_v63 = vpop.f32.mrf.mxu1 }
 0x157   : > { %v1498_v0 = vadd.f32 %v1497_v62, %v1496_v61 }
 0x158   : > { %v1499_v1 = vpop.f32.mrf.mxu0  ;;  %v965_v3 = vpop.f32.mrf.mxu1 }
 0x159   : > { %v966_v4 = vadd.f32 %v1498_v0, %v965_v3  ;;  %v355_v3 = vld [vmem:[%s2292_s18 + $0x48] sm:$0xff] }
 0x15a   : > { %v1500_v5 = vpop.f32.mrf.mxu0  ;;  %v1607_v6 = vpop.f32.mrf.mxu1 }
 0x15b   : > { %v1060_v7 = vadd.f32 %v966_v4, %v346_v2  ;;  %v1501_v8 = vadd.f32 %v1500_v5, %v1499_v1 }
 0x15c   : > { %v1502_v9 = vpop.f32.mrf.mxu0  ;;  %v968_v11 = vpop.f32.mrf.mxu1 }
 0x15d   : > { %1084 = vst [vmem:[%s2292_s18] sm:$0xff] %v1060_v7  ;;  %v969_v12 = vadd.f32 %v1501_v8, %v968_v11 }
 0x15e   : > { %v1503_v13 = vpop.f32.mrf.mxu0  ;;  %v1610_v14 = vpop.f32.mrf.mxu1 }
 0x15f   : > { %v1061_v15 = vadd.f32 %v969_v12, %v347_v10  ;;  %v1504_v16 = vadd.f32 %v1503_v13, %v1502_v9  ;;  %v356_v9 = vld [vmem:[%s2292_s18 + $0x50] sm:$0xff] }
 0x160   : > { %v1505_v18 = vpop.f32.mrf.mxu0  ;;  %v981_v21 = vpop.f32.mrf.mxu1 }
 0x161   : > { %1085 = vst [vmem:[%s2292_s18 + $0x8] sm:$0xff] %v1061_v15  ;;  %v974_v19 = vadd.f32 %v1606_v63, %v1504_v16  ;;  %v357_v16 = vld [vmem:[%s2292_s18 + $0x58] sm:$0xff] }
 0x162   : > { %v1506_v20 = vpop.f32.mrf.mxu0  ;;  %v1611_v28 = vpop.f32.mrf.mxu1 }
 0x163   : > { %v1062_v22 = vadd.f32 %v974_v19, %v348_v17  ;;  %v1507_v23 = vadd.f32 %v1506_v20, %v1505_v18 }
 0x164   : > { %v1508_v25 = vpop.f32.mrf.mxu0  ;;  %v984_v35 = vpop.f32.mrf.mxu1 }
 0x165   : > { %1086 = vst [vmem:[%s2292_s18 + $0x10] sm:$0xff] %v1062_v22  ;;  %v977_v26 = vadd.f32 %v1607_v6, %v1507_v23 }
 0x166   : > { %v1509_v27 = vpop.f32.mrf.mxu0  ;;  %v1614_v42 = vpop.f32.mrf.mxu1 }
 0x167   : > { %v1063_v29 = vadd.f32 %v977_v26, %v349_v24  ;;  %v1510_v30 = vadd.f32 %v1509_v27, %v1508_v25  ;;  %v358_v24 = vld [vmem:[%s2292_s18 + $0x60] sm:$0xff] }
 0x168   : > { %v1511_v31 = vpop.f32.mrf.mxu0  ;;  %v997_v49 = vpop.f32.mrf.mxu1 }
 0x169   : > { %1087 = vst [vmem:[%s2292_s18 + $0x18] sm:$0xff] %v1063_v29  ;;  %v982_v33 = vadd.f32 %v1510_v30, %v981_v21 }
 0x16a   : > { %v1512_v34 = vpop.f32.mrf.mxu0  ;;  %v1615_v56 = vpop.f32.mrf.mxu1 }
 0x16b   : > { %v1064_v36 = vadd.f32 %v982_v33, %v350_v32  ;;  %v1513_v37 = vadd.f32 %v1512_v34, %v1511_v31  ;;  %v359_v31 = vld [vmem:[%s2292_s18 + $0x68] sm:$0xff] }
 0x16c   : > { %v1514_v38 = vpop.f32.mrf.mxu0  ;;  %v1000_v63 = vpop.f32.mrf.mxu1 }
 0x16d   : > { %1088 = vst [vmem:[%s2292_s18 + $0x20] sm:$0xff] %v1064_v36  ;;  %v985_v40 = vadd.f32 %v1513_v37, %v984_v35  ;;  %v360_v37 = vld [vmem:[%s2292_s18 + $0x70] sm:$0xff] }
 0x16e   : > { %v1515_v41 = vpop.f32.mrf.mxu0  ;;  %v1618_v6 = vpop.f32.mrf.mxu1 }
 0x16f   : > { %v1065_v43 = vadd.f32 %v985_v40, %v351_v39  ;;  %v1516_v44 = vadd.f32 %v1515_v41, %v1514_v38 }
 0x170   : > { %v1517_v46 = vpop.f32.mrf.mxu0  ;;  %v1013_v13 = vpop.f32.mrf.mxu1 }
 0x171   : > { %1089 = vst [vmem:[%s2292_s18 + $0x28] sm:$0xff] %v1065_v43  ;;  %v990_v47 = vadd.f32 %v1610_v14, %v1516_v44  ;;  %v361_v44 = vld [vmem:[%s2292_s18 + $0x78] sm:$0xff] }
 0x172   : > { %v1518_v48 = vpop.f32.mrf.mxu0  ;;  %v1619_v20 = vpop.f32.mrf.mxu1 }
 0x173   : > { %v1066_v50 = vadd.f32 %v990_v47, %v352_v45  ;;  %v1519_v51 = vadd.f32 %v1518_v48, %v1517_v46 }
 0x174   : > { %v1520_v53 = vpop.f32.mrf.mxu0  ;;  %v1016_v27 = vpop.f32.mrf.mxu1 }
 0x175   : > { %1090 = vst [vmem:[%s2292_s18 + $0x30] sm:$0xff] %v1066_v50  ;;  %v993_v54 = vadd.f32 %v1611_v28, %v1519_v51 }
 0x176   : > { %v1521_v55 = vpop.f32.mrf.mxu0  ;;  %v1622_v34 = vpop.f32.mrf.mxu1 }
 0x177   : > { %v1067_v57 = vadd.f32 %v993_v54, %v353_v52  ;;  %v1522_v58 = vadd.f32 %v1521_v55, %v1520_v53  ;;  %v362_v52 = vld [vmem:[%s2292_s18 + $0x80] sm:$0xff] }
 0x178   : > { %v1523_v59 = vpop.f32.mrf.mxu0  ;;  %v1029_v41 = vpop.f32.mrf.mxu1 }
 0x179   : > { %1091 = vst [vmem:[%s2292_s18 + $0x38] sm:$0xff] %v1067_v57  ;;  %v998_v61 = vadd.f32 %v1522_v58, %v997_v49 }
 0x17a   : > { %v1524_v62 = vpop.f32.mrf.mxu0  ;;  %v1623_v48 = vpop.f32.mrf.mxu1 }
 0x17b   : > { %v1068_v0 = vadd.f32 %v998_v61, %v354_v60  ;;  %v1525_v1 = vadd.f32 %v1524_v62, %v1523_v59  ;;  %v363_v59 = vld [vmem:[%s2292_s18 + $0x88] sm:$0xff] }
 0x17c   : > { %v1526_v2 = vpop.f32.mrf.mxu0  ;;  %v1032_v55 = vpop.f32.mrf.mxu1 }
 0x17d   : > { %1092 = vst [vmem:[%s2292_s18 + $0x40] sm:$0xff] %v1068_v0  ;;  %v1001_v4 = vadd.f32 %v1525_v1, %v1000_v63  ;;  %v364_v1 = vld [vmem:[%s2292_s18 + $0x90] sm:$0xff] }
 0x17e   : > { %v1527_v5 = vpop.f32.mrf.mxu0  ;;  %v1626_v62 = vpop.f32.mrf.mxu1 }
 0x17f   : > { %v1069_v7 = vadd.f32 %v1001_v4, %v355_v3  ;;  %v1528_v8 = vadd.f32 %v1527_v5, %v1526_v2 }
 0x180   : > { %v1529_v10 = vpop.f32.mrf.mxu0  ;;  %v1045_v5 = vpop.f32.mrf.mxu1 }
 0x181   : > { %1093 = vst [vmem:[%s2292_s18 + $0x48] sm:$0xff] %v1069_v7  ;;  %v1006_v11 = vadd.f32 %v1614_v42, %v1528_v8  ;;  %v365_v8 = vld [vmem:[%s2292_s18 + $0x98] sm:$0xff] }
 0x182   : > { %v1530_v12 = vpop.f32.mrf.mxu0 }
 0x183   : > { %v1070_v14 = vadd.f32 %v1006_v11, %v356_v9  ;;  %v1531_v15 = vadd.f32 %v1530_v12, %v1529_v10  ;;  %v1627_v12 = vpop.f32.mrf.mxu1 }
 0x184   : > { %v1532_v17 = vpop.f32.mrf.mxu0 }
 0x185   : > { %1094 = vst [vmem:[%s2292_s18 + $0x50] sm:$0xff] %v1070_v14  ;;  %v1009_v18 = vadd.f32 %v1615_v56, %v1531_v15 }
 0x186   : > { %v1533_v19 = vpop.f32.mrf.mxu0 }
 0x187   : > { %v1071_v21 = vadd.f32 %v1009_v18, %v357_v16  ;;  %v1534_v22 = vadd.f32 %v1533_v19, %v1532_v17  ;;  %v366_v16 = vld [vmem:[%s2292_s18 + $0xa0] sm:$0xff]  ;;  %v1048_v19 = vpop.f32.mrf.mxu1 }
 0x188   : > { %v1535_v23 = vpop.f32.mrf.mxu0 }
 0x189   : > { %1095 = vst [vmem:[%s2292_s18 + $0x58] sm:$0xff] %v1071_v21  ;;  %v1014_v25 = vadd.f32 %v1534_v22, %v1013_v13 }
 0x18a   : > { %v1536_v26 = vpop.f32.mrf.mxu0 }
 0x18b   : > { %v1072_v28 = vadd.f32 %v1014_v25, %v358_v24  ;;  %v1537_v29 = vadd.f32 %v1536_v26, %v1535_v23  ;;  %v367_v23 = vld [vmem:[%s2292_s18 + $0xa8] sm:$0xff] }
 0x18c   : > { %v1538_v30 = vpop.f32.mrf.mxu0 }
 0x18d   : > { %1096 = vst [vmem:[%s2292_s18 + $0x60] sm:$0xff] %v1072_v28  ;;  %v1017_v32 = vadd.f32 %v1537_v29, %v1016_v27  ;;  %v368_v28 = vld [vmem:[%s2292_s18 + $0xb0] sm:$0xff] }
 0x18e   : > { %v1539_v33 = vpop.f32.mrf.mxu0 }
 0x18f   : > { %v1073_v35 = vadd.f32 %v1017_v32, %v359_v31  ;;  %v1540_v36 = vadd.f32 %v1539_v33, %v1538_v30 }
 0x190   : > { %v1541_v38 = vpop.f32.mrf.mxu0 }
 0x191   : > { %1097 = vst [vmem:[%s2292_s18 + $0x68] sm:$0xff] %v1073_v35  ;;  %v1022_v39 = vadd.f32 %v1618_v6, %v1540_v36 }
 0x192   : > { %v1542_v40 = vpop.f32.mrf.mxu0 }
 0x193   : > { %v1074_v42 = vadd.f32 %v1022_v39, %v360_v37  ;;  %v1543_v43 = vadd.f32 %v1542_v40, %v1541_v38 }
 0x194   : > { %v1544_v45 = vpop.f32.mrf.mxu0 }
 0x195   : > { %1098 = vst [vmem:[%s2292_s18 + $0x70] sm:$0xff] %v1074_v42  ;;  %v1025_v46 = vadd.f32 %v1619_v20, %v1543_v43 }
 0x196   : > { %v1545_v47 = vpop.f32.mrf.mxu0 }
 0x197   : > { %v1075_v49 = vadd.f32 %v1025_v46, %v361_v44  ;;  %v1546_v50 = vadd.f32 %v1545_v47, %v1544_v45 }
 0x198   : > { %v1547_v51 = vpop.f32.mrf.mxu0 }
 0x199   : > { %1099 = vst [vmem:[%s2292_s18 + $0x78] sm:$0xff] %v1075_v49  ;;  %v1030_v53 = vadd.f32 %v1546_v50, %v1029_v41 }
 0x19a   : > { %v1548_v54 = vpop.f32.mrf.mxu0 }
 0x19b   : > { %v1076_v56 = vadd.f32 %v1030_v53, %v362_v52  ;;  %v1549_v57 = vadd.f32 %v1548_v54, %v1547_v51 }
 0x19c   : > { %v1550_v58 = vpop.f32.mrf.mxu0 }
 0x19d   : > { %1100 = vst [vmem:[%s2292_s18 + $0x80] sm:$0xff] %v1076_v56  ;;  %v1033_v60 = vadd.f32 %v1549_v57, %v1032_v55 }
 0x19e   : > { %v1551_v61 = vpop.f32.mrf.mxu0 }
 0x19f   : > { %v1077_v63 = vadd.f32 %v1033_v60, %v363_v59  ;;  %v1552_v0 = vadd.f32 %v1551_v61, %v1550_v58 }
 0x1a0   : > { %v1553_v2 = vpop.f32.mrf.mxu0 }
 0x1a1   : > { %1101 = vst [vmem:[%s2292_s18 + $0x88] sm:$0xff] %v1077_v63  ;;  %v1038_v3 = vadd.f32 %v1622_v34, %v1552_v0  ;;  %v369_v34 = vld [vmem:[%s2292_s18 + $0xb8] sm:$0xff] }
 0x1a2   : > { %v1554_v4 = vpop.f32.mrf.mxu0 }
 0x1a3   : > { %v1078_v6 = vadd.f32 %v1038_v3, %v364_v1  ;;  %v1555_v7 = vadd.f32 %v1554_v4, %v1553_v2 }
 0x1a4   : > { %v1556_v9 = vpop.f32.mrf.mxu0 }
 0x1a5   : > { %1102 = vst [vmem:[%s2292_s18 + $0x90] sm:$0xff] %v1078_v6  ;;  %v1041_v10 = vadd.f32 %v1623_v48, %v1555_v7 }
 0x1a6   : > { %v1557_v11 = vpop.f32.mrf.mxu0 }
 0x1a7   : > { %v1079_v13 = vadd.f32 %v1041_v10, %v365_v8  ;;  %v1558_v14 = vadd.f32 %v1557_v11, %v1556_v9 }
 0x1a8   : > { %v1559_v15 = vpop.f32.mrf.mxu0 }
 0x1a9   : > { %1103 = vst [vmem:[%s2292_s18 + $0x98] sm:$0xff] %v1079_v13  ;;  %v1046_v17 = vadd.f32 %v1558_v14, %v1045_v5 }
 0x1aa   : > { %v1560_v18 = vpop.f32.mrf.mxu0 }
 0x1ab   : > { %v1080_v20 = vadd.f32 %v1046_v17, %v366_v16  ;;  %v1561_v21 = vadd.f32 %v1560_v18, %v1559_v15 }
 0x1ac   : > { %v1562_v22 = vpop.f32.mrf.mxu0 }
 0x1ad   : > { %1104 = vst [vmem:[%s2292_s18 + $0xa0] sm:$0xff] %v1080_v20  ;;  %v1049_v24 = vadd.f32 %v1561_v21, %v1048_v19 }
 0x1ae   : > { %v1563_v25 = vpop.f32.mrf.mxu0 }
 0x1af   : > { %v1081_v26 = vadd.f32 %v1049_v24, %v367_v23  ;;  %v1564_v27 = vadd.f32 %v1563_v25, %v1562_v22 }
 0x1b0   : > { %v1565_v29 = vpop.f32.mrf.mxu0 }
 0x1b1   : > { %1105 = vst [vmem:[%s2292_s18 + $0xa8] sm:$0xff] %v1081_v26  ;;  %v1054_v30 = vadd.f32 %v1626_v62, %v1564_v27 }
 0x1b2   : > { %v1566_v31 = vpop.f32.mrf.mxu0 }
 0x1b3   : > { %v1082_v32 = vadd.f32 %v1054_v30, %v368_v28  ;;  %v1567_v33 = vadd.f32 %v1566_v31, %v1565_v29 }
 0x1b5   : > { %1106 = vst [vmem:[%s2292_s18 + $0xb0] sm:$0xff] %v1082_v32  ;;  %v1057_v35 = vadd.f32 %v1627_v12, %v1567_v33  ;;  %1111 = sbr.rel (%p1472_p13) target bundleno = 467 (0x1d3), region = 52 }
 0x1b7   : > { %v1083_v36 = vadd.f32 %v1057_v35, %v369_v34 }
 0x1b9   : > { %1107 = vst [vmem:[%s2292_s18 + $0xb8] sm:$0xff] %v1083_v36 }
 0x1ba   : > { %v1112_v37 = vld [vmem:[%s2292_s18] sm:$0xff]  ;;  %v1113_v41 = vld [vmem:[%s2292_s18 + $0x8] sm:$0xff]  ;;  %v1114_v42 = vld [vmem:[%s2292_s18 + $0x10] sm:$0xff] }
 0x1bb   : > { %v2432_v38 = vld [vmem:[%s2650_s4] ss:$0 sm:$0xff]  ;;  %v1115_v43 = vld [vmem:[%s2292_s18 + $0x18] sm:$0xff]  ;;  %v1117_v48 = vld [vmem:[%s2292_s18 + $0x28] sm:$0xff] }
 0x1bc   : > { %v2437_v39 = vld [vmem:[%s2651_s0] ss:$0 sm:$0xff]  ;;  %v1143_v40 = vmul.f32 %v2432_v38, %v1112_v37  ;;  %v1144_v44 = vmul.f32 %v2432_v38, %v1113_v41  ;;  %v1145_v45 = vmul.f32 %v2432_v38, %v1114_v42  ;;  %v1146_v46 = vmul.f32 %v2432_v38, %v1115_v43  ;;  %v1118_v49 = vld [vmem:[%s2292_s18 + $0x30] sm:$0xff]  ;;  %v1119_v54 = vld [vmem:[%s2292_s18 + $0x38] sm:$0xff] }
 0x1bd   : > { %v1116_v47 = vld [vmem:[%s2292_s18 + $0x20] sm:$0xff]  ;;  %v1148_v52 = vmul.f32 %v2432_v38, %v1117_v48  ;;  %v1149_v53 = vmul.f32 %v2432_v38, %v1118_v49  ;;  %v1150_v58 = vmul.f32 %v2432_v38, %v1119_v54  ;;  %v1121_v0 = vld [vmem:[%s2292_s18 + $0x48] sm:$0xff]  ;;  %v1122_v1 = vld [vmem:[%s2292_s18 + $0x50] sm:$0xff] }
 0x1be   : > { %v1174_v50 = vadd.f32 %v2437_v39, %v1143_v40  ;;  %v1147_v51 = vmul.f32 %v2432_v38, %v1116_v47  ;;  %v1175_v55 = vadd.f32 %v2437_v39, %v1144_v44  ;;  %v1176_v56 = vadd.f32 %v2437_v39, %v1145_v45  ;;  %v1120_v59 = vld [vmem:[%s2292_s18 + $0x40] sm:$0xff]  ;;  %v1123_v2 = vld [vmem:[%s2292_s18 + $0x58] sm:$0xff]  ;;  %v1125_v8 = vld [vmem:[%s2292_s18 + $0x68] sm:$0xff] }
 0x1bf   : > { %v1177_v57 = vadd.f32 %v2437_v39, %v1146_v46  ;;  %v1179_v62 = vadd.f32 %v2437_v39, %v1148_v52  ;;  %v1180_v63 = vadd.f32 %v2437_v39, %v1149_v53  ;;  %v1181_v6 = vadd.f32 %v2437_v39, %v1150_v58  ;;  %v1124_v7 = vld [vmem:[%s2292_s18 + $0x60] sm:$0xff]  ;;  %v1126_v9 = vld [vmem:[%s2292_s18 + $0x70] sm:$0xff]  ;;  %v1127_v14 = vld [vmem:[%s2292_s18 + $0x78] sm:$0xff] }
 0x1c0   : > { %v1198_v60 = vmax.f32 %v1174_v50, 0.0  ;;  %v1178_v61 = vadd.f32 %v2437_v39, %v1147_v51  ;;  %v1199_v3 = vmax.f32 %v1175_v55, 0.0  ;;  %v1200_v4 = vmax.f32 %v1176_v56, 0.0  ;;  %v1128_v27 = vld [vmem:[%s2292_s18 + $0x80] sm:$0xff]  ;;  %v1129_v32 = vld [vmem:[%s2292_s18 + $0x88] sm:$0xff]  ;;  %v1130_v33 = vld [vmem:[%s2292_s18 + $0x90] sm:$0xff] }
 0x1c1   : > { %v1201_v5 = vmax.f32 %v1177_v57, 0.0  ;;  %v1203_v11 = vmax.f32 %v1179_v62, 0.0  ;;  %v1204_v12 = vmax.f32 %v1180_v63, 0.0  ;;  %v1151_v13 = vmul.f32 %v2432_v38, %v1120_v59  ;;  %v1131_v34 = vld [vmem:[%s2292_s18 + $0x98] sm:$0xff]  ;;  %v1132_v41 = vld [vmem:[%s2292_s18 + $0xa0] sm:$0xff]  ;;  %v1133_v42 = vld [vmem:[%s2292_s18 + $0xa8] sm:$0xff] }
 0x1c2   : > { %1222 = vst [vmem:[%s2292_s18] sm:$0xff] %v1198_v60  ;;  %v1202_v10 = vmax.f32 %v1178_v61, 0.0  ;;  %1223 = vst [vmem:[%s2292_s18 + $0x8] sm:$0xff] %v1199_v3  ;;  %v1205_v15 = vmax.f32 %v1181_v6, 0.0  ;;  %v1152_v16 = vmul.f32 %v2432_v38, %v1121_v0  ;;  %v1153_v17 = vmul.f32 %v2432_v38, %v1122_v1  ;;  %v1134_v43 = vld [vmem:[%s2292_s18 + $0xb0] sm:$0xff]  ;;  %v1135_v48 = vld [vmem:[%s2292_s18 + $0xb8] sm:$0xff] }
 0x1c3   : > { %1224 = vst [vmem:[%s2292_s18 + $0x10] sm:$0xff] %v1200_v4  ;;  %1225 = vst [vmem:[%s2292_s18 + $0x18] sm:$0xff] %v1201_v5  ;;  %v1154_v18 = vmul.f32 %v2432_v38, %v1123_v2  ;;  %v1182_v19 = vadd.f32 %v2437_v39, %v1151_v13  ;;  %v1155_v20 = vmul.f32 %v2432_v38, %v1124_v7 }
 0x1c4   : > { %1226 = vst [vmem:[%s2292_s18 + $0x20] sm:$0xff] %v1202_v10  ;;  %1227 = vst [vmem:[%s2292_s18 + $0x28] sm:$0xff] %v1203_v11  ;;  %v1156_v21 = vmul.f32 %v2432_v38, %v1125_v8  ;;  %v1157_v22 = vmul.f32 %v2432_v38, %v1126_v9  ;;  %v1183_v23 = vadd.f32 %v2437_v39, %v1152_v16 }
 0x1c5   : > { %1228 = vst [vmem:[%s2292_s18 + $0x30] sm:$0xff] %v1204_v12  ;;  %1229 = vst [vmem:[%s2292_s18 + $0x38] sm:$0xff] %v1205_v15  ;;  %v1184_v24 = vadd.f32 %v2437_v39, %v1153_v17  ;;  %v1185_v25 = vadd.f32 %v2437_v39, %v1154_v18  ;;  %v1158_v26 = vmul.f32 %v2432_v38, %v1127_v14  ;;  %v1206_v28 = vmax.f32 %v1182_v19, 0.0 }
 0x1c6   : > { %v1186_v29 = vadd.f32 %v2437_v39, %v1155_v20  ;;  %v1187_v30 = vadd.f32 %v2437_v39, %v1156_v21  ;;  %v1188_v31 = vadd.f32 %v2437_v39, %v1157_v22  ;;  %v1207_v35 = vmax.f32 %v1183_v23, 0.0 }
 0x1c7   : > { %v1208_v36 = vmax.f32 %v1184_v24, 0.0  ;;  %v1209_v37 = vmax.f32 %v1185_v25, 0.0  ;;  %v1189_v40 = vadd.f32 %v2437_v39, %v1158_v26  ;;  %1230 = vst [vmem:[%s2292_s18 + $0x40] sm:$0xff] %v1206_v28  ;;  %v1159_v47 = vmul.f32 %v2432_v38, %v1128_v27 }
 0x1c8   : > { %v1210_v44 = vmax.f32 %v1186_v29, 0.0  ;;  %v1211_v45 = vmax.f32 %v1187_v30, 0.0  ;;  %v1212_v46 = vmax.f32 %v1188_v31, 0.0  ;;  %1231 = vst [vmem:[%s2292_s18 + $0x48] sm:$0xff] %v1207_v35  ;;  %v1160_v50 = vmul.f32 %v2432_v38, %v1129_v32 }
 0x1c9   : > { %1232 = vst [vmem:[%s2292_s18 + $0x50] sm:$0xff] %v1208_v36  ;;  %1233 = vst [vmem:[%s2292_s18 + $0x58] sm:$0xff] %v1209_v37  ;;  %v1213_v49 = vmax.f32 %v1189_v40, 0.0  ;;  %v1161_v51 = vmul.f32 %v2432_v38, %v1130_v33  ;;  %v1162_v52 = vmul.f32 %v2432_v38, %v1131_v34  ;;  %v1190_v53 = vadd.f32 %v2437_v39, %v1159_v47 }
 0x1ca   : > { %1234 = vst [vmem:[%s2292_s18 + $0x60] sm:$0xff] %v1210_v44  ;;  %1235 = vst [vmem:[%s2292_s18 + $0x68] sm:$0xff] %v1211_v45  ;;  %v1163_v54 = vmul.f32 %v2432_v38, %v1132_v41  ;;  %v1164_v55 = vmul.f32 %v2432_v38, %v1133_v42  ;;  %v1165_v56 = vmul.f32 %v2432_v38, %v1134_v43 }
 0x1cb   : > { %1236 = vst [vmem:[%s2292_s18 + $0x70] sm:$0xff] %v1212_v46  ;;  %1237 = vst [vmem:[%s2292_s18 + $0x78] sm:$0xff] %v1213_v49  ;;  %v1191_v57 = vadd.f32 %v2437_v39, %v1160_v50  ;;  %v1192_v58 = vadd.f32 %v2437_v39, %v1161_v51  ;;  %v1193_v59 = vadd.f32 %v2437_v39, %v1162_v52  ;;  %v1214_v61 = vmax.f32 %v1190_v53, 0.0 }
 0x1cc   : > { %v1166_v60 = vmul.f32 %v2432_v38, %v1135_v48  ;;  %v1194_v62 = vadd.f32 %v2437_v39, %v1163_v54  ;;  %v1195_v63 = vadd.f32 %v2437_v39, %v1164_v55  ;;  %v1196_v0 = vadd.f32 %v2437_v39, %v1165_v56 }
 0x1cd   : > { %v1215_v1 = vmax.f32 %v1191_v57, 0.0  ;;  %v1216_v2 = vmax.f32 %v1192_v58, 0.0  ;;  %v1217_v3 = vmax.f32 %v1193_v59, 0.0  ;;  %1238 = vst [vmem:[%s2292_s18 + $0x80] sm:$0xff] %v1214_v61 }
 0x1ce   : > { %v1197_v4 = vadd.f32 %v2437_v39, %v1166_v60  ;;  %v1218_v5 = vmax.f32 %v1194_v62, 0.0  ;;  %v1219_v6 = vmax.f32 %v1195_v63, 0.0  ;;  %v1220_v38 = vmax.f32 %v1196_v0, 0.0 }
 0x1cf   : > { %1239 = vst [vmem:[%s2292_s18 + $0x88] sm:$0xff] %v1215_v1  ;;  %1240 = vst [vmem:[%s2292_s18 + $0x90] sm:$0xff] %v1216_v2 }
 0x1d0   : > { %1241 = vst [vmem:[%s2292_s18 + $0x98] sm:$0xff] %v1217_v3  ;;  %v1221_v7 = vmax.f32 %v1197_v4, 0.0  ;;  %1242 = vst [vmem:[%s2292_s18 + $0xa0] sm:$0xff] %v1218_v5 }
 0x1d1   : > { %1243 = vst [vmem:[%s2292_s18 + $0xa8] sm:$0xff] %v1219_v6  ;;  %1244 = vst [vmem:[%s2292_s18 + $0xb0] sm:$0xff] %v1220_v38 }
 0x1d2   : > { %1245 = vst [vmem:[%s2292_s18 + $0xb8] sm:$0xff] %v1221_v7 }
 0x1d3 PF: > { %s2652_s27 = sld [smem:[#allocation12_spill]]  ;;  %s1261_s24 = sshll.u32 %s2292_s18, 4  ;;  %s2541_s24 = int_to_ptr.vmem [resolvable:$true] %s1261_s24 }
 0x1d4   : > { %s2653_s9 = sld [smem:[#allocation19_spill]]  ;;  %s2545_s6 = scalar_lea.sflag [#allocation4], %s304_s29 }
 0x1d5   : > { %s1902_s25 = scalar_lea.vmem %s2541_s24, 3072  ;;  %s2060_s5 = smov [#allocation7]  }
 0x1d6   : > { %p1903_p7 = scmp.ne.s32.totalorder %s2541_s24, %s1902_s25  ;;  %s1906_s18 = sshll.u32 %s2060_s5, 4  ;;  %s1907_s18 = int_to_ptr.vmem [resolvable:$false] %s1906_s18 }
 0x1d7   : > { %s1908_s4 = scalar_lea.vmem %s1907_s18, 6144  ;;  %p1909_p1 = scmp.lt.s32.totalorder %s2541_s24, %s1907_s18 }
 0x1d8   : > { %p1904_p11 = pnand %p1903_p7, %p2248_p8  ;;  %p1910_p3 = scmp.lt.s32.totalorder %s1908_s4, %s1902_s25 }
 0x1d9   : > { %s1479_s10 = smul.u32 3072, %s2652_s27 }
 0x1da   : > { %p1905_p9 = pneg %p1904_p11  ;;  %p1911_p4 = por %p1910_p3, %p1909_p1 }
 0x1db   : > { %s2539_s11 = scalar_lea.hbm %s2653_s9, %s1479_s10 }
 0x1dc   : > { %p1912_p5 = pnand %p1911_p4, %p1905_p9 }
 0x1de   : > { %1915 = shalt.err (!%p1912_p5)
}
 0x1df   : > { %s1916_s29 = scalar_lea.hbm %s2539_s11, 3072  ;;  %s1920_s0 = scalar_lea.hbm %s2653_s9, 9216 }
 0x1e0   : > { %p1917_p6 = scmp.ne.s32.totalorder %s2539_s11, %s1916_s29  ;;  %p1921_p10 = scmp.lt.s32.totalorder %s2539_s11, %s2653_s9 }
 0x1e1   : > { %p1922_p13 = scmp.lt.s32.totalorder %s1920_s0, %s1916_s29 }
 0x1e2   : > { %p1918_p0 = pnand %p1917_p6, %p2248_p8 }
 0x1e3   : > { %p1923_p7 = por %p1922_p13, %p1921_p10 }
 0x1e4   : > { %p1919_p12 = pneg %p1918_p0 }
 0x1e6   : > { %p1924_p11 = pnand %p1923_p7, %p1919_p12 }
 0x1e8   : > { %1927 = shalt.err (!%p1924_p11)
}
 0x1e9   : > { %s2061_s3 = smov 128   ;;  %s2062_s30 = smov 8  }
 0x1ea   : > { %1638 = dma.vmem_to_hbm [thread:$0]  (%p2248_p8), %s2541_s24, 3072, %s2539_s11, %s2545_s6, %s2061_s3, %s2061_s3, %s2062_s30  }
 0x1eb PF: > { %p1653_p9 = scmp.ge.s32.totalorder %s2050_s28, 2  ;;  %s1276_s25 = sand.u32 1, %s1998_s15  }
 0x1ec   : > { %s1277_s5 = scalar_lea.sflag [#allocation4], %s1276_s25 }
 0x1ed   : > { %p1648_p1 = pnand %p1653_p9, %p2254_p2 }
 0x1ef   : > { %p1649_p3 = pneg %p1648_p1 }
 0x1f1   : > { %1993 = dma.done.wait (%p1649_p3), %s1277_s5, 3072  }
 0x1f2   : > { %1995 = vsyncadd (%p1649_p3), %s1277_s5, 4294964224  ;;  %s23_s28 = sadd.s32 1, %s2050_s28   ;;  %s2655_s25 = sld [smem:[#allocation13_spill]] }
 0x1f3   : > { %p2573_p4 = scmp.ge.s32.totalorder %s23_s28, 8   ;;  %s2656_s12 = sld [smem:[#allocation14_spill]] }
 0x1f4   : > { %s2657_s27 = sld [smem:[#allocation15_spill]]  ;;  %s2659_s15 = smov %s2002_s16 }
 0x1f5   : > { %s2660_s16 = smov %s2006_s17  ;;  %s2661_s17 = smov %s2188_s13 }
 0x1f6   : > { %s2662_s18 = smov %s2014_s19  ;;  %s2663_s19 = smov %s2018_s20 }
 0x1f7   : > { %s2664_s20 = smov %s2230_s2  ;;  %s2665_s21 = smov %s2026_s22 }
 0x1f8   : > { %s2666_s22 = smov %s2030_s23  ;;  %s2667_s23 = smov %s2191_s14 }
 0x1f9   : > { %s2668_s24 = smov %s2042_s26  ;;  %s2669_s26 = smov %s2656_s12 }
 0x1fa   :  { %22 = sbr.rel (!%p2573_p4) target bundleno = 17 (0x11), region = 108 }
 0x1ff   :  { %1282 = vsyncpa [#allocation3], 1 }
 0x200   :  { %1284 = vsyncpa [#allocation3 + $0x1], 1 }
 0x201   :  { %1285 = vsyncpa [#allocation6], 1 }
 0x202   :  { %1287 = vsyncpa [#allocation6 + $0x1], 1 }
 0x203   :  { %1288 = vsyncpa [#allocation4], 1 }
 0x204   :  { %1290 = vsyncpa [#allocation4 + $0x1], 1 }

</bundles_post_ra>
